<compile_context>
chip_gen: v7x
topology: tpu7x:2x2x1
jax: 0.10.0
libtpu: 0.0.40
codegen_flags: <defaults>
</compile_context>

<pallas_src>
import functools
import math

import jax
import jax.numpy as jnp
from jax.experimental import pallas as pl
from jax.experimental.pallas import tpu as pltpu


def _round_up(x, m):
    return ((x + m - 1) // m) * m


def _choose_tile(dim, cap, min_blocks=1):
    """`dim` is a multiple of 128.  Return the largest multiple of 128 that
    divides `dim` exactly, is <= cap, and (when possible) leaves at least
    `min_blocks` blocks along this axis."""
    cap = min(cap, dim)
    if min_blocks > 1 and dim >= min_blocks * 128:
        cap = min(cap, dim // min_blocks)
    cap = max(128, (cap // 128) * 128)
    t = cap
    while t > 128 and dim % t != 0:
        t -= 128
    return t


def _equal_conv2d_mm_kernel(x_ref, w_ref, b_ref, o_ref, acc_ref, *,
                            scale, tk, n_k, w_resident):
    """Tiled matmul with equalized-lr scaling + bias epilogue.

    x_ref : (tm, tk)        im2col patches (bf16)
    w_ref : (K_pad, tn)     resident weight slab   (if w_resident)
            (tk, tn)        streamed weight tile   (otherwise)
    b_ref : (1, tn)         bias (f32)
    o_ref : (tm, tn)        output tile
    acc_ref: (tm, tn)       f32 accumulator scratch
    """
    k = pl.program_id(2)

    if w_resident and n_k > 1:
        # Slice the needed rows out of the VMEM-resident weight slab.
        w_tile = w_ref[pl.ds(pl.multiple_of(k * tk, tk), tk), :]
    else:
        w_tile = w_ref[...]

    prod = jnp.dot(x_ref[...], w_tile, preferred_element_type=jnp.float32)

    @pl.when(k == 0)
    def _():
        # Write directly on the first reduction step (no zero-fill + add).
        acc_ref[...] = prod

    @pl.when(k > 0)
    def _():
        acc_ref[...] += prod

    @pl.when(k == n_k - 1)
    def _():
        # Scalar equalized-lr scale on the (tm, tn) result (identical math to
        # scaling the weight), bias added once in the epilogue.
        o_ref[...] = (acc_ref[...] * scale + b_ref[...]).astype(o_ref.dtype)


def _im2col(x, K, stride, padding):
    """NCHW -> (N*OH*OW, Cin*K*K) patch matrix (feature order: c, kh, kw)."""
    N, C, H, W = x.shape
    xp = jnp.pad(x, ((0, 0), (0, 0), (padding, padding), (padding, padding)))
    Hp, Wp = H + 2 * padding, W + 2 * padding
    OH = (Hp - K) // stride + 1
    OW = (Wp - K) // stride + 1
    cols = []
    for i in range(K):
        for j in range(K):
            cols.append(xp[:, :,
                           i:i + (OH - 1) * stride + 1:stride,
                           j:j + (OW - 1) * stride + 1:stride])
    # (K*K, N, C, OH, OW) -> (N, OH, OW, C, K*K) -> (N*OH*OW, C*K*K)
    P = jnp.stack(cols, axis=0).transpose(1, 3, 4, 2, 0)
    X = P.reshape(N * OH * OW, C * K * K)
    return X, OH, OW


def equal_conv2d(x, weight, bias=None, *, stride=1, padding=0):
    """Pallas implementation of EqualConv2d.forward.

    x:      (N, Cin, H, W)
    weight: (Cout, Cin, K, K)
    bias:   (Cout,) or None
    """
    N, C_in, H, W = x.shape
    C_out, C_in_w, KH, KW = weight.shape
    assert C_in == C_in_w and KH == KW
    K = KH
    scale = 1.0 / math.sqrt(C_in * K * K)

    # Layout plumbing in the wrapper (one-time XLA ops, not per-tile work).
    X, OH, OW = _im2col(x, K, stride, padding)       # (M, Kdim)
    M, Kdim = X.shape
    Wt = weight.reshape(C_out, Kdim).T               # (Kdim, Cout), pre-transposed

    if bias is None:
        bias = jnp.zeros((C_out,), dtype=jnp.float32)

    # --- Padding: only up to the next multiple of 128, tiles divide exactly.
    M_pad = _round_up(M, 128)
    K_pad = _round_up(Kdim, 128)
    N_pad = _round_up(C_out, 128)

    tm = _choose_tile(M_pad, 512, min_blocks=2)      # >=2 i-blocks when possible
    tn = _choose_tile(N_pad, 512)
    tk = _choose_tile(K_pad, 1024)

    n_j = N_pad // tn
    n_i = M_pad // tm
    n_k = K_pad // tk

    # --- bf16 operands for the MXU, f32 accumulation kept in-kernel.
    Xp = jnp.pad(X.astype(jnp.bfloat16), ((0, M_pad - M), (0, K_pad - Kdim)))
    Wp = jnp.pad(Wt.astype(jnp.bfloat16), ((0, K_pad - Kdim), (0, N_pad - C_out)))
    bp = jnp.pad(bias.astype(jnp.float32), (0, N_pad - C_out)).reshape(1, N_pad)

    # --- VMEM budgeting (double-buffered inputs/outputs + f32 acc).
    bf = 2  # bf16 bytes
    x_buf = 2 * tm * tk * bf
    out_buf = 2 * tm * tn * 4
    acc_buf = tm * tn * 4
    bias_buf = 2 * tn * 4
    base = x_buf + out_buf + acc_buf + bias_buf
    w_res_buf = 2 * K_pad * tn * bf                  # resident weight slab
    w_stream_buf = 2 * tk * tn * bf
    w_resident = (base + w_res_buf) <= (40 << 20)    # keep total <= ~40 MiB (v7x-safe)
    need = base + (w_res_buf if w_resident else w_stream_buf)
    vmem_limit = int(min(48 << 20, max(32 << 20, need + (8 << 20))))

    # --- Grid: j (Cout tiles) outermost so the resident weight slab is DMA'd
    #     from HBM exactly once; k (reduction) innermost for the accumulator.
    grid = (n_j, n_i, n_k)

    if w_resident:
        w_spec = pl.BlockSpec((K_pad, tn), lambda j, i, k: (0, j))
        w_traffic = K_pad * N_pad * bf               # single pass over the weight
    else:
        w_spec = pl.BlockSpec((tk, tn), lambda j, i, k: (k, j))
        w_traffic = K_pad * N_pad * bf * n_i

    cost = pl.CostEstimate(
        flops=2 * M_pad * K_pad * N_pad,
        transcendentals=0,
        bytes_accessed=(M_pad * K_pad * bf * n_j     # X re-streamed per j-tile
                        + w_traffic
                        + M_pad * N_pad * 4),        # f32 output
    )

    kernel = functools.partial(_equal_conv2d_mm_kernel, scale=scale,
                               tk=tk, n_k=n_k, w_resident=w_resident)

    out = pl.pallas_call(
        kernel,
        out_shape=jax.ShapeDtypeStruct((M_pad, N_pad), x.dtype),
        grid_spec=pltpu.PrefetchScalarGridSpec(
            num_scalar_prefetch=0,
            grid=grid,
            in_specs=[
                pl.BlockSpec((tm, tk), lambda j, i, k: (i, k)),
                w_spec,
                pl.BlockSpec((1, tn), lambda j, i, k: (0, j)),
            ],
            out_specs=pl.BlockSpec((tm, tn), lambda j, i, k: (i, j)),
            scratch_shapes=[pltpu.VMEM((tm, tn), jnp.float32)],
        ),
        compiler_params=pltpu.CompilerParams(
            dimension_semantics=("parallel", "parallel", "arbitrary"),
            vmem_limit_bytes=vmem_limit),
        cost_estimate=cost,
    )(Xp, Wp, bp)

    out = out[:M, :C_out]                            # strip alignment padding
    out = out.reshape(N, OH, OW, C_out)
    return jnp.transpose(out, (0, 3, 1, 2))          # NCHW to match PyTorch


if __name__ == "__main__":
    key = jax.random.PRNGKey(0)
    k1, k2, k3 = jax.random.split(key, 3)

    batch, in_ch, out_ch, size, ksize = 2, 4, 8, 16, 3

    x = jax.random.normal(k1, (batch, in_ch, size, size), dtype=jnp.float32)
    # weight = randn(out_channel, in_channel, K, K) as in the module's __init__
    weight = jax.random.normal(k2, (out_ch, in_ch, ksize, ksize), dtype=jnp.float32)
    bias = jax.random.normal(k3, (out_ch,), dtype=jnp.float32) * 0.1

    def ref_conv(x, w, b, stride, padding):
        s = 1.0 / math.sqrt(w.shape[1] * w.shape[2] * w.shape[3])
        out = jax.lax.conv_general_dilated(
            x, w * s, window_strides=(stride, stride),
            padding=[(padding, padding), (padding, padding)],
            dimension_numbers=("NCHW", "OIHW", "NCHW"))
        if b is not None:
            out = out + b.reshape(1, -1, 1, 1)
        return out

    # Config A: kernel=3, stride=1, padding=1, with bias.
    out_a = jax.block_until_ready(equal_conv2d(x, weight, bias, stride=1, padding=1))
    ref_a = ref_conv(x, weight, bias, 1, 1)
    assert out_a.shape == ref_a.shape, (out_a.shape, ref_a.shape)
    assert jnp.allclose(out_a, ref_a, atol=2e-2, rtol=2e-2), "mismatch vs reference (A)"

    # Config B: kernel=3, stride=2, padding=0, no bias.
    out_b = jax.block_until_ready(equal_conv2d(x, weight, None, stride=2, padding=0))
    ref_b = ref_conv(x, weight, None, 2, 0)
    assert out_b.shape == ref_b.shape, (out_b.shape, ref_b.shape)
    assert jnp.allclose(out_b, ref_b, atol=2e-2, rtol=2e-2), "mismatch vs reference (B)"

    print("KERNEL_OK")
</pallas_src>

<mosaic_0001>
module attributes {stable_mosaic.version = 11 : i64} {
  func.func @_equal_conv2d_mm_kernel(%arg0: i32, %arg1: i32, %arg2: i32, %arg3: memref<256x128xbf16, #tpu.memory_space<vmem>>, %arg4: memref<128x128xbf16, #tpu.memory_space<vmem>>, %arg5: memref<1x128xf32, #tpu.memory_space<vmem>>, %arg6: memref<256x128xf32, #tpu.memory_space<vmem>>, %arg7: memref<256x128xf32, #tpu.memory_space<vmem>>) attributes {dimension_semantics = [#tpu.dimension_semantics<parallel>, #tpu.dimension_semantics<parallel>, #tpu.dimension_semantics<arbitrary>], iteration_bounds = array<i64: 1, 2, 1>, scalar_prefetch = 0 : i64, scratch_operands = 1 : i64, tpu.core_type = #tpu.core_type<tc>, window_params = [{transform_indices = @transform_0, window_bounds = array<i64: 256, 128>}, {transform_indices = @transform_1, window_bounds = array<i64: 128, 128>}, {transform_indices = @transform_2, window_bounds = array<i64: 1, 128>}, {transform_indices = @transform_3, window_bounds = array<i64: 256, 128>}]} {
    %c0 = arith.constant 0 : index
    %c0_0 = arith.constant 0 : index
    %0 = vector.load %arg4[%c0, %c0_0] : memref<128x128xbf16, #tpu.memory_space<vmem>>, vector<128x128xbf16>
    %c0_1 = arith.constant 0 : index
    %c0_2 = arith.constant 0 : index
    %1 = vector.load %arg3[%c0_1, %c0_2] : memref<256x128xbf16, #tpu.memory_space<vmem>>, vector<256x128xbf16>
    %cst = arith.constant dense<0.000000e+00> : vector<256x128xf32>
    %2 = tpu.matmul %1, %0, %cst {dimension_numbers = #tpu.dot_dimension_numbers<[1], [0], [0], [1], [0, 0, 1, 1], [], []>} : vector<256x128xbf16>, vector<128x128xbf16>, vector<256x128xf32> -> vector<256x128xf32>
    %c0_i32 = arith.constant 0 : i32
    %3 = arith.cmpi eq, %arg2, %c0_i32 : i32
    %4 = arith.extui %3 : i1 to i32
    %c0_i32_3 = arith.constant 0 : i32
    %5 = arith.cmpi ne, %4, %c0_i32_3 : i32
    scf.if %5 {
      %c0_8 = arith.constant 0 : index
      %c0_9 = arith.constant 0 : index
      %12 = vector.load %arg7[%c0_8, %c0_9] : memref<256x128xf32, #tpu.memory_space<vmem>>, vector<256x128xf32>
      tpu.vector_store %arg7[%c0_8, %c0_9], %2 {strides = array<i32>} : memref<256x128xf32, #tpu.memory_space<vmem>>, vector<256x128xf32>,
    } else {
    }
    %c0_i32_4 = arith.constant 0 : i32
    %6 = arith.cmpi sgt, %arg2, %c0_i32_4 : i32
    %7 = arith.extui %6 : i1 to i32
    %c0_i32_5 = arith.constant 0 : i32
    %8 = arith.cmpi ne, %7, %c0_i32_5 : i32
    scf.if %8 {
      %c0_8 = arith.constant 0 : index
      %c0_9 = arith.constant 0 : index
      %12 = vector.load %arg7[%c0_8, %c0_9] : memref<256x128xf32, #tpu.memory_space<vmem>>, vector<256x128xf32>
      %13 = arith.addf %12, %2 : vector<256x128xf32>
      %c0_10 = arith.constant 0 : index
      %c0_11 = arith.constant 0 : index
      %14 = vector.load %arg7[%c0_10, %c0_11] : memref<256x128xf32, #tpu.memory_space<vmem>>, vector<256x128xf32>
      tpu.vector_store %arg7[%c0_10, %c0_11], %13 {strides = array<i32>} : memref<256x128xf32, #tpu.memory_space<vmem>>, vector<256x128xf32>,
    } else {
    }
    %c0_i32_6 = arith.constant 0 : i32
    %9 = arith.cmpi eq, %arg2, %c0_i32_6 : i32
    %10 = arith.extui %9 : i1 to i32
    %c0_i32_7 = arith.constant 0 : i32
    %11 = arith.cmpi ne, %10, %c0_i32_7 : i32
    scf.if %11 {
      %c0_8 = arith.constant 0 : index
      %c0_9 = arith.constant 0 : index
      %12 = vector.load %arg7[%c0_8, %c0_9] : memref<256x128xf32, #tpu.memory_space<vmem>>, vector<256x128xf32>
      %cst_10 = arith.constant 0.166666672 : f32
      %13 = vector.broadcast %cst_10 : f32 to vector<256x128xf32>
      %14 = arith.mulf %12, %13 : vector<256x128xf32>
      %c0_11 = arith.constant 0 : index
      %c0_12 = arith.constant 0 : index
      %15 = vector.load %arg5[%c0_11, %c0_12] : memref<1x128xf32, #tpu.memory_space<vmem>>, vector<1x128xf32>
      %16 = vector.broadcast %15 : vector<1x128xf32> to vector<256x128xf32>
      %17 = arith.addf %14, %16 : vector<256x128xf32>
      %c0_13 = arith.constant 0 : index
      %c0_14 = arith.constant 0 : index
      %18 = vector.load %arg6[%c0_13, %c0_14] : memref<256x128xf32, #tpu.memory_space<vmem>>, vector<256x128xf32>
      tpu.vector_store %arg6[%c0_13, %c0_14], %17 {strides = array<i32>} : memref<256x128xf32, #tpu.memory_space<vmem>>, vector<256x128xf32>,
    } else {
    }
    return
  }
  func.func @transform_0(%arg0: i32, %arg1: i32, %arg2: i32) -> (i32, i32) {
    %c0_i32 = arith.constant 0 : i32
    return %arg1, %arg2 : i32, i32
  }
  func.func @transform_1(%arg0: i32, %arg1: i32, %arg2: i32) -> (i32, i32) {
    %c0_i32 = arith.constant 0 : i32
    %c0_i32_0 = arith.constant 0 : i32
    return %c0_i32, %arg0 : i32, i32
  }
  func.func @transform_2(%arg0: i32, %arg1: i32, %arg2: i32) -> (i32, i32) {
    %c0_i32 = arith.constant 0 : i32
    %c0_i32_0 = arith.constant 0 : i32
    return %c0_i32, %arg0 : i32, i32
  }
  func.func @transform_3(%arg0: i32, %arg1: i32, %arg2: i32) -> (i32, i32) {
    %c0_i32 = arith.constant 0 : i32
    return %arg1, %arg0 : i32, i32
  }
}

</mosaic_0001>

<bundles_post_ra>
// kernel: tpu_custom_call.1
= control target key start
LH: loop header
LB: loop body
LE: loop exit
PB: predicated region body
PF: predicated region fallthrough
CT: control target
= control target key end

     0   :  { %8 = vsyncpa [#allocation4], 0  ;;  %s1729_s0 = inlined_call_operand.hbm [shape: bf16[512,128], index: 0, kind: input, shape index: {}]   ;;  %s1730_s1 = inlined_call_operand.hbm [shape: bf16[128,128], index: 1, kind: input, shape index: {}]   ;;  %s1731_s2 = inlined_call_operand.vmem [shape: f32[1,128], index: 2, kind: input, shape index: {}]   ;;  %s1732_s3 = inlined_call_operand.hbm [shape: f32[512,128], index: 3, kind: output, shape index: {}]  }
   0x1   :  { %10 = vsyncpa [#allocation4 + $0x1], 0 }
   0x2   :  { %11 = vsyncpa [#allocation7], 0 }
   0x3   :  { %12 = vsyncpa [#allocation5], 0 }
   0x4   :  { %14 = vsyncpa [#allocation5 + $0x1], 0  ;;  %s1413_s12 = smov 0   ;;  %s1415_s13 = smov 0  }
   0x5   :  { %s1417_s14 = smov 0   ;;  %s1419_s15 = smov 0  }
   0x6   :  { %s1421_s16 = smov 0   ;;  %s1423_s17 = smov 0  }
   0x7 LB: > { %s1006_s18 = sadd.s32 4294967295, %s1384_s17   ;;  %s1007_s19 = sadd.s32 4294967294, %s1384_s17   ;;  %s1384_s17 = sphi %s1423_s17, %s20_s17   ;;  %s1380_s16 = sphi %s1421_s16, %s1756_s16   ;;  %s1376_s15 = sphi %s1419_s15, %s1755_s15   ;;  %s1372_s14 = sphi %s1417_s14, %s1754_s14   ;;  %s1368_s13 = sphi %s1415_s13, %s1753_s13   ;;  %s1364_s12 = sphi %s1413_s12, %s1752_s12  }
   0x8   : > { %p61_p0 = scmp.ne.s32.totalorder %s1368_s13, %s1364_s12  ;;  %p1447_p1 = scmp.eq.s32.totalorder %s1006_s18, 0 }
   0x9   : > { %p1451_p2 = scmp.eq.s32.totalorder %s1006_s18, 1  ;;  %p145_p3 = scmp.eq.s32.totalorder %s1007_s19, 1 }
   0xa   : > { %s1737_s20 = scalar_select %p1447_p1, 1, 0 }
   0xb   : > { %s1738_s21 = scalar_select %p1451_p2, 1, 0 }
   0xc   : > { %p1457_p4 = por %p1447_p1, %p61_p0  ;;  %p1008_p5 = scmp.ge.s32.totalorder %s1384_s17, 1 }
   0xd   : > { %p1462_p6 = por %p145_p3, %p61_p0  ;;  %p152_p7 = scmp.lt.s32.totalorder %s1384_s17, 3 }
   0xe   : > { %s1739_s22 = scalar_select %p1457_p4, 1, 0 }
   0xf   : > { %s1740_s23 = scalar_select %p1462_p6, 1, 0 }
  0x10   : > { %p1467_p8 = pnand %p1008_p5, %p152_p7  ;;  %s1386_s25 = smov [#allocation6]  }
  0x11   : > { %s166_s26 = sshll.u32 %s1386_s25, 4  ;;  %s35_s28 = sadd.s32 1, %s1380_s16  ;;  %s167_s26 = int_to_ptr.vmem [resolvable:$true] %s166_s26 }
  0x12   : > { %s1741_s24 = scalar_select %p1467_p8, 1, 0 }
  0x13   : > { %p1147_p9 = pneg %p1467_p8  ;;  %s1240_s4 = scalar_lea.hbm %s1730_s1, 1024 }
  0x14   : > { %p1241_p12 = scmp.ne.s32.totalorder %s1730_s1, %s1240_s4  ;;  %p1247_p5 = scmp.lt.u32.totalorder %s1240_s4, %s1730_s1 }
  0x15   : > { %p1476_p11 = pnand %p1147_p9, %p1447_p1 }
  0x17   : > { %p1242_p13 = pneg %p1476_p11 }
  0x19   : > { %p1243_p0 = pnand %p1242_p13, %p1241_p12 }
  0x1b   : > { %p1244_p3 = pneg %p1243_p0 }
  0x1d   : > { %p1249_p7 = pnand %p1247_p5, %p1244_p3 }
  0x1f   : > { %1252 = shalt.err (!%p1249_p7)
}
  0x20   : > { %s1253_s9 = scalar_lea.vmem %s167_s26, 1024  ;;  %p1261_p1 = scmp.lt.s32.totalorder %s167_s26, %s167_s26 }
  0x21   : > { %p1254_p9 = scmp.ne.s32.totalorder %s167_s26, %s1253_s9  ;;  %p1262_p4 = scmp.lt.s32.totalorder %s1253_s9, %s1253_s9 }
  0x23   : > { %p1256_p10 = pnand %p1254_p9, %p1242_p13  ;;  %p1263_p8 = por %p1262_p4, %p1261_p1 }
  0x25   : > { %p1257_p6 = pneg %p1256_p10 }
  0x27   : > { %p1264_p2 = pnand %p1263_p8, %p1257_p6 }
  0x29   : > { %1267 = shalt.err (!%p1264_p2)
}
  0x2a   : > { %s1387_s10 = smov 64   ;;  %s1388_s11 = smov 4  }
  0x2b   : > { %1150 = dma.hbm_to_vmem [thread:$0]  (!%p1476_p11), %s1730_s1, 1024, %s167_s26, [#allocation7], %s1387_s10, %s1387_s10, %s1388_s11  }
  0x2c   : > { %p37_p1 = scmp.ge.s32.totalorder %s35_s28, 2  ;;  %s48_s25 = sadd.s32 1, %s1372_s14 }
  0x2d   : > { %p55_p2 = scmp.ne.s32.totalorder %s1372_s14, %s1368_s13  ;;  %p56_p4 = scmp.eq.s32.totalorder %s1384_s17, 0 }
  0x2e   : > { %s1758_s28 = smov (%p37_p1, %s35_s28), 0  ;;  %p1744_p8 = scmp.ne.s32.totalorder %s1738_s21, 0 }
  0x2f   : > { %p1506_p6 = por %p56_p4, %p55_p2  ;;  %s43_s30 = ssub.s32 %s1380_s16, %s1758_s28 }
  0x30   : > { %p1512_p10 = por %p1744_p8, %p55_p2  ;;  %p1160_p12 = scmp.lt.s32.totalorder %s1384_s17, 2 }
  0x31   : > { %p46_p11 = scmp.eq.s32.totalorder %s43_s30, 0  ;;  %s186_s26 = sand.u32 1, %s1372_s14  }
  0x32   : > { %s1012_s4 = sshll.u32 %s186_s26, 7  ;;  %s1049_s6 = sshll.u32 %s1380_s16, 11 }
  0x33   : > { %s1521_s5 = scalar_select %p46_p11, %s1372_s14, %s48_s25  }
  0x34   : > { %s1527_s9 = scalar_lea.hbm %s1729_s0, %s1049_s6  ;;  %s190_s21 = scalar_lea.vmem [#allocation3], %s1012_s4 }
  0x35   : > { %s198_s18 = sshll.u32 %s190_s21, 4  ;;  %p1533_p13 = pnand %p1160_p12, %p1506_p6  ;;  %s1529_s18 = int_to_ptr.vmem [resolvable:$true] %s198_s18 }
  0x36   : > { %s1537_s25 = scalar_lea.sflag [#allocation4], %s186_s26  ;;  %s1268_s30 = scalar_lea.hbm %s1527_s9, 2048 }
  0x37   : > { %p1269_p0 = scmp.ne.s32.totalorder %s1527_s9, %s1268_s30  ;;  %p1270_p3 = pneg %p1533_p13 }
  0x38   : > { %s1273_s29 = scalar_lea.hbm %s1729_s0, 4096  ;;  %p1274_p9 = scmp.lt.u32.totalorder %s1527_s9, %s1729_s0 }
  0x39   : > { %p1271_p5 = pnand %p1270_p3, %p1269_p0  ;;  %p1275_p1 = scmp.lt.u32.totalorder %s1273_s29, %s1268_s30 }
  0x3a   : > { %p1277_p4 = scmp.lt.u32.totalorder %s1268_s30, %s1527_s9 }
  0x3b   : > { %p1272_p7 = pneg %p1271_p5  ;;  %p1276_p2 = por %p1275_p1, %p1274_p9 }
  0x3d   : > { %p1278_p6 = por %p1277_p4, %p1276_p2 }
  0x3f   : > { %p1279_p8 = pnand %p1278_p6, %p1272_p7 }
  0x41   : > { %1282 = shalt.err (!%p1279_p8)
}
  0x42   : > { %s1283_s26 = scalar_lea.vmem %s1529_s18, 2048  ;;  %s1389_s21 = smov [#allocation3]  }
  0x43   : > { %p1284_p12 = scmp.ne.s32.totalorder %s1529_s18, %s1283_s26  ;;  %s1288_s4 = sshll.u32 %s1389_s21, 4  ;;  %s1289_s4 = int_to_ptr.vmem [resolvable:$false] %s1288_s4 }
  0x44   : > { %s1290_s6 = scalar_lea.vmem %s1289_s4, 4096  ;;  %p1291_p5 = scmp.lt.s32.totalorder %s1529_s18, %s1289_s4 }
  0x45   : > { %p1286_p11 = pnand %p1284_p12, %p1270_p3  ;;  %p1292_p9 = scmp.lt.s32.totalorder %s1290_s6, %s1283_s26 }
  0x47   : > { %p1287_p0 = pneg %p1286_p11  ;;  %p1293_p1 = por %p1292_p9, %p1291_p5 }
  0x49   : > { %p1294_p2 = pnand %p1293_p1, %p1287_p0 }
  0x4b   : > { %1297 = shalt.err (!%p1294_p2)
}
  0x4c   : > { %1154 = dma.hbm_to_vmem [thread:$0]  (!%p1533_p13), %s1527_s9, 2048, %s1529_s18, %s1537_s25, %s1387_s10, %s1387_s10, %s1388_s11  }
  0x4d   : > { %p1747_p3 = scmp.ne.s32.totalorder %s1741_s24, 0 }
  0x4e   : > { %s1571_s30 = sand.u32 (!%p1747_p3), 1, %s1368_s13   ;;  %p1748_p7 = scmp.ne.s32.totalorder (!%p1747_p3), %s1739_s22, 0 }
  0x4f   : > { %210 = sbr.rel (%p1747_p3) target bundleno = 381 (0x17d), region = 32  ;;  %s1016_s29 = sshll.u32 (!%p1747_p3), %s1571_s30, 7 }
  0x50   : > { %s213_s7 = scalar_lea.sflag (!%p1747_p3), [#allocation4], %s1571_s30  ;;  %s1575_s8 = scalar_lea.vmem (!%p1747_p3), [#allocation3], %s1016_s29 }
  0x56   : > { %1351 = dma.done.wait (%p1748_p7), %s213_s7, 2048  }
  0x57   : > { %1353 = vsyncadd (%p1748_p7), %s213_s7, 4294965248  ;;  %p1749_p13 = scmp.ne.s32.totalorder %s1737_s20, 0 }
  0x59   : > { %1355 = dma.done.wait (%p1749_p13), [#allocation7], 1024  }
  0x5a   : > { %1357 = vsyncadd (%p1749_p13), [#allocation7], 4294966272  ;;  %v1216_v0 = vld [vmem:[#allocation6] sm:$0xff]   ;;  %v1217_v1 = vld [vmem:[#allocation6 + $0x8] sm:$0xff]   ;;  %s1018_s20 = sshll.u32 %s1571_s30, 8  ;;  %s1050_s11 = sshll.u32 %s1376_s15, 12 }
  0x5b   : > { %1075 = vmatprep.subr.bf16.mxu0 %v1216_v0  ;;  %1123 = vmatprep.subr.bf16.mxu1 %v1216_v0  ;;  %v1218_v2 = vld [vmem:[#allocation6 + $0x10] sm:$0xff]   ;;  %v1219_v3 = vld [vmem:[#allocation6 + $0x18] sm:$0xff]   ;;  %v1224_v4 = vld [vmem:[%s1575_s8] sm:$0xff]   ;;  %s1611_s10 = scalar_lea.vmem [#allocation8], %s1018_s20  ;;  %s1670_s19 = scalar_lea.hbm %s1732_s3, %s1050_s11 }
  0x5c   : > { %1076 = vmatpush3.bf16.msra.mxu0 %v1216_v0  ;;  %1131 = vmatpush3.bf16.msra.mxu1 %v1216_v0  ;;  %v1225_v5 = vld [vmem:[%s1575_s8 + $0x40] sm:$0xff]   ;;  %v1221_v7 = vld [vmem:[#allocation6 + $0x28] sm:$0xff]   ;;  %v1222_v8 = vld [vmem:[#allocation6 + $0x30] sm:$0xff]   ;;  %s894_s9 = sshll.u32 %s1611_s10, 4  ;;  %s880_s25 = scalar_lea.sflag [#allocation5], %s1571_s30  ;;  %s1672_s9 = int_to_ptr.vmem [resolvable:$true] %s894_s9 }
  0x5d   : > { %1077 = vmatprep.subr.bf16.mxu0 %v1217_v1  ;;  %1124 = vmatprep.subr.bf16.mxu1 %v1217_v1  ;;  %v1220_v6 = vld [vmem:[#allocation6 + $0x20] sm:$0xff]   ;;  %v1223_v9 = vld [vmem:[#allocation6 + $0x38] sm:$0xff]   ;;  %v1226_v10 = vld [vmem:[%s1575_s8 + $0x8] sm:$0xff]   ;;  %s1298_s26 = scalar_lea.vmem %s1672_s9, 4096  ;;  %s1390_s21 = smov [#allocation8]  }
  0x5e   : > { %1091 = vmatprep.mubr.bf16.mxu0 %v1224_v4  ;;  %1107 = vmatprep.mubr.bf16.mxu1 %v1225_v5  ;;  %v1227_v11 = vld [vmem:[%s1575_s8 + $0x48] sm:$0xff]   ;;  %v1228_v12 = vld [vmem:[%s1575_s8 + $0x10] sm:$0xff]   ;;  %v1230_v14 = vld [vmem:[%s1575_s8 + $0x18] sm:$0xff]   ;;  %p1299_p4 = scmp.ne.s32.totalorder %s1672_s9, %s1298_s26  ;;  %s1302_s4 = sshll.u32 %s1390_s21, 4  ;;  %s1303_s4 = int_to_ptr.vmem [resolvable:$false] %s1302_s4 }
  0x5f   : > { %v1229_v13 = vld [vmem:[%s1575_s8 + $0x50] sm:$0xff]   ;;  %v1231_v15 = vld [vmem:[%s1575_s8 + $0x58] sm:$0xff]   ;;  %v1232_v16 = vld [vmem:[%s1575_s8 + $0x20] sm:$0xff]   ;;  %s1304_s6 = scalar_lea.vmem %s1303_s4, 8192  ;;  %p1305_p12 = scmp.lt.s32.totalorder %s1672_s9, %s1303_s4 }
  0x60   : > { %1078 = vmatpush3.bf16.msra.mxu0 %v1217_v1  ;;  %1132 = vmatpush3.bf16.msra.mxu1 %v1217_v1  ;;  %v1233_v17 = vld [vmem:[%s1575_s8 + $0x60] sm:$0xff]   ;;  %v1234_v18 = vld [vmem:[%s1575_s8 + $0x28] sm:$0xff]   ;;  %v1236_v20 = vld [vmem:[%s1575_s8 + $0x30] sm:$0xff]   ;;  %p1300_p6 = pnand %p1299_p4, %p1512_p10  ;;  %p1306_p11 = scmp.lt.s32.totalorder %s1304_s6, %s1298_s26 }
  0x61   : > { %1079 = vmatprep.subr.bf16.mxu0 %v1218_v2  ;;  %1125 = vmatprep.subr.bf16.mxu1 %v1218_v2  ;;  %v1235_v19 = vld [vmem:[%s1575_s8 + $0x68] sm:$0xff]   ;;  %v1237_v21 = vld [vmem:[%s1575_s8 + $0x70] sm:$0xff]   ;;  %v1238_v22 = vld [vmem:[%s1575_s8 + $0x38] sm:$0xff]  }
  0x62   : > { %v1239_v23 = vld [vmem:[%s1575_s8 + $0x78] sm:$0xff]   ;;  %v1605_v25 = vld [vmem:[%s1731_s2] ss:$0 sm:$0xff]  ;;  %p1301_p8 = pneg %p1300_p6  ;;  %p1307_p0 = por %p1306_p11, %p1305_p12 }
  0x64   : > { %1080 = vmatpush3.bf16.msra.mxu0 %v1218_v2  ;;  %1133 = vmatpush3.bf16.msra.mxu1 %v1218_v2  ;;  %p1308_p5 = pnand %p1307_p0, %p1301_p8 }
  0x65   : > { %1081 = vmatprep.subr.bf16.mxu0 %v1219_v3  ;;  %1126 = vmatprep.subr.bf16.mxu1 %v1219_v3 }
  0x68   : > { %1082 = vmatpush3.bf16.msra.mxu0 %v1219_v3  ;;  %1134 = vmatpush3.bf16.msra.mxu1 %v1219_v3 }
  0x69   : > { %1083 = vmatprep.subr.bf16.mxu0 %v1220_v6  ;;  %1127 = vmatprep.subr.bf16.mxu1 %v1220_v6 }
  0x6c   : > { %1084 = vmatpush3.bf16.msra.mxu0 %v1220_v6  ;;  %1135 = vmatpush3.bf16.msra.mxu1 %v1220_v6 }
  0x6d   : > { %1085 = vmatprep.subr.bf16.mxu0 %v1221_v7  ;;  %1128 = vmatprep.subr.bf16.mxu1 %v1221_v7 }
  0x70   : > { %1086 = vmatpush3.bf16.msra.mxu0 %v1221_v7  ;;  %1136 = vmatpush3.bf16.msra.mxu1 %v1221_v7 }
  0x71   : > { %1087 = vmatprep.subr.bf16.mxu0 %v1222_v8  ;;  %1129 = vmatprep.subr.bf16.mxu1 %v1222_v8 }
  0x74   : > { %1088 = vmatpush3.bf16.msra.mxu0 %v1222_v8  ;;  %1137 = vmatpush3.bf16.msra.mxu1 %v1222_v8 }
  0x75   : > { %1089 = vmatprep.subr.bf16.mxu0 %v1223_v9  ;;  %1130 = vmatprep.subr.bf16.mxu1 %v1223_v9 }
  0x78   : > { %1090 = vmatpush3.bf16.msra.mxu0 %v1223_v9  ;;  %1138 = vmatpush3.bf16.msra.mxu1 %v1223_v9 }
  0x7b   : > { %1092 = vmatmul.mubr.bf16.vlgmr.msra.gmra.mrb[0].mxu0 %v1226_v10  ;;  %1108 = vmatmul.mubr.bf16.vlgmr.msra.gmra.mrb[0].mxu1 %v1227_v11 }
  0x7c   : > { %1095 = vmatprep.mubr.bf16.mxu0 %v1228_v12  ;;  %1111 = vmatprep.mubr.bf16.mxu1 %v1229_v13 }
  0x83   : > { %1096 = vmatmul.mubr.bf16.gmra.mrb[4].mxu0 %v1230_v14  ;;  %1112 = vmatmul.mubr.bf16.gmra.mrb[4].mxu1 %v1231_v15 }
  0x84   : > { %1099 = vmatprep.mubr.bf16.mxu0 %v1232_v16  ;;  %1115 = vmatprep.mubr.bf16.mxu1 %v1233_v17 }
  0x8b   : > { %1100 = vmatmul.mubr.bf16.gmra.mrb[8].mxu0 %v1234_v18  ;;  %1116 = vmatmul.mubr.bf16.gmra.mrb[8].mxu1 %v1235_v19 }
  0x8c   : > { %1103 = vmatprep.mubr.bf16.mxu0 %v1236_v20  ;;  %1119 = vmatprep.mubr.bf16.mxu1 %v1237_v21 }
  0x93   : > { %1104 = vmatmul.mubr.bf16.gmra.mrb[12].mxu0 %v1238_v22  ;;  %1120 = vmatmul.mubr.bf16.gmra.mrb[12].mxu1 %v1239_v23 }
 0x14e   : > { %v1093_v24 = vpop.f32.mrb[0].mxu0  ;;  %v1109_v26 = vpop.f32.mrb[0].mxu1 }
 0x14f   : > { %v778_v27 = vmul.f32 0.16666667, %v1093_v24  ;;  %v794_v28 = vmul.f32 0.16666667, %v1109_v26  ;;  %v478_v29 = vpop.f32.mrb[1].mxu0  ;;  %v542_v30 = vpop.f32.mrb[1].mxu1 }
 0x150   : > { %v776_v31 = vmul.f32 0.16666667, %v478_v29  ;;  %v792_v32 = vmul.f32 0.16666667, %v542_v30  ;;  %v1094_v33 = vpop.f32.mrb[2].mxu0  ;;  %v1110_v34 = vpop.f32.mrb[2].mxu1 }
 0x151   : > { %v817_v35 = vadd.f32 %v1605_v25, %v778_v27  ;;  %v833_v36 = vadd.f32 %v1605_v25, %v794_v28  ;;  %v779_v37 = vmul.f32 0.16666667, %v1094_v33  ;;  %v795_v38 = vmul.f32 0.16666667, %v1110_v34  ;;  %v481_v39 = vpop.f32.mrb[3].mxu0  ;;  %v545_v40 = vpop.f32.mrb[3].mxu1 }
 0x152   : > { %v815_v41 = vadd.f32 %v1605_v25, %v776_v31  ;;  %v831_v42 = vadd.f32 %v1605_v25, %v792_v32  ;;  %v777_v43 = vmul.f32 0.16666667, %v481_v39  ;;  %v793_v44 = vmul.f32 0.16666667, %v545_v40 }
 0x153   : > { %849 = vst [vmem:[%s1611_s10 + $0x10] sm:$0xff] %v817_v35  ;;  %865 = vst [vmem:[%s1611_s10 + $0x90] sm:$0xff] %v833_v36  ;;  %v818_v45 = vadd.f32 %v1605_v25, %v779_v37  ;;  %v834_v46 = vadd.f32 %v1605_v25, %v795_v38 }
 0x154   : > { %847 = vst [vmem:[%s1611_s10] sm:$0xff] %v815_v41  ;;  %863 = vst [vmem:[%s1611_s10 + $0x80] sm:$0xff] %v831_v42  ;;  %v816_v47 = vadd.f32 %v1605_v25, %v777_v43  ;;  %v832_v48 = vadd.f32 %v1605_v25, %v793_v44 }
 0x155   : > { %850 = vst [vmem:[%s1611_s10 + $0x18] sm:$0xff] %v818_v45  ;;  %866 = vst [vmem:[%s1611_s10 + $0x98] sm:$0xff] %v834_v46 }
 0x156   : > { %848 = vst [vmem:[%s1611_s10 + $0x8] sm:$0xff] %v816_v47  ;;  %864 = vst [vmem:[%s1611_s10 + $0x88] sm:$0xff] %v832_v48  ;;  %v1097_v49 = vpop.f32.mrb[4].mxu0  ;;  %v1113_v50 = vpop.f32.mrb[4].mxu1 }
 0x157   : > { %v782_v51 = vmul.f32 0.16666667, %v1097_v49  ;;  %v798_v52 = vmul.f32 0.16666667, %v1113_v50  ;;  %v494_v53 = vpop.f32.mrb[5].mxu0  ;;  %v558_v54 = vpop.f32.mrb[5].mxu1 }
 0x158   : > { %v780_v55 = vmul.f32 0.16666667, %v494_v53  ;;  %v796_v56 = vmul.f32 0.16666667, %v558_v54  ;;  %v1098_v57 = vpop.f32.mrb[6].mxu0  ;;  %v1114_v58 = vpop.f32.mrb[6].mxu1 }
 0x159   : > { %v821_v59 = vadd.f32 %v1605_v25, %v782_v51  ;;  %v837_v60 = vadd.f32 %v1605_v25, %v798_v52  ;;  %v783_v61 = vmul.f32 0.16666667, %v1098_v57  ;;  %v799_v62 = vmul.f32 0.16666667, %v1114_v58  ;;  %v497_v63 = vpop.f32.mrb[7].mxu0  ;;  %v561_v0 = vpop.f32.mrb[7].mxu1 }
 0x15a   : > { %v819_v1 = vadd.f32 %v1605_v25, %v780_v55  ;;  %v835_v2 = vadd.f32 %v1605_v25, %v796_v56  ;;  %v781_v3 = vmul.f32 0.16666667, %v497_v63  ;;  %v797_v4 = vmul.f32 0.16666667, %v561_v0 }
 0x15b   : > { %853 = vst [vmem:[%s1611_s10 + $0x30] sm:$0xff] %v821_v59  ;;  %869 = vst [vmem:[%s1611_s10 + $0xb0] sm:$0xff] %v837_v60  ;;  %v822_v5 = vadd.f32 %v1605_v25, %v783_v61  ;;  %v838_v6 = vadd.f32 %v1605_v25, %v799_v62 }
 0x15c   : > { %851 = vst [vmem:[%s1611_s10 + $0x20] sm:$0xff] %v819_v1  ;;  %867 = vst [vmem:[%s1611_s10 + $0xa0] sm:$0xff] %v835_v2  ;;  %v820_v7 = vadd.f32 %v1605_v25, %v781_v3  ;;  %v836_v8 = vadd.f32 %v1605_v25, %v797_v4 }
 0x15d   : > { %854 = vst [vmem:[%s1611_s10 + $0x38] sm:$0xff] %v822_v5  ;;  %870 = vst [vmem:[%s1611_s10 + $0xb8] sm:$0xff] %v838_v6 }
 0x15e   : > { %852 = vst [vmem:[%s1611_s10 + $0x28] sm:$0xff] %v820_v7  ;;  %868 = vst [vmem:[%s1611_s10 + $0xa8] sm:$0xff] %v836_v8  ;;  %v1101_v9 = vpop.f32.mrb[8].mxu0  ;;  %v1117_v10 = vpop.f32.mrb[8].mxu1 }
 0x15f   : > { %v786_v11 = vmul.f32 0.16666667, %v1101_v9  ;;  %v802_v12 = vmul.f32 0.16666667, %v1117_v10  ;;  %v510_v13 = vpop.f32.mrb[9].mxu0  ;;  %v574_v14 = vpop.f32.mrb[9].mxu1 }
 0x160   : > { %v784_v15 = vmul.f32 0.16666667, %v510_v13  ;;  %v800_v16 = vmul.f32 0.16666667, %v574_v14  ;;  %v1102_v17 = vpop.f32.mrb[10].mxu0  ;;  %v1118_v18 = vpop.f32.mrb[10].mxu1 }
 0x161   : > { %v825_v19 = vadd.f32 %v1605_v25, %v786_v11  ;;  %v841_v20 = vadd.f32 %v1605_v25, %v802_v12  ;;  %v787_v21 = vmul.f32 0.16666667, %v1102_v17  ;;  %v803_v22 = vmul.f32 0.16666667, %v1118_v18  ;;  %v513_v23 = vpop.f32.mrb[11].mxu0  ;;  %v577_v24 = vpop.f32.mrb[11].mxu1 }
 0x162   : > { %v823_v26 = vadd.f32 %v1605_v25, %v784_v15  ;;  %v839_v27 = vadd.f32 %v1605_v25, %v800_v16  ;;  %v785_v28 = vmul.f32 0.16666667, %v513_v23  ;;  %v801_v29 = vmul.f32 0.16666667, %v577_v24 }
 0x163   : > { %857 = vst [vmem:[%s1611_s10 + $0x50] sm:$0xff] %v825_v19  ;;  %873 = vst [vmem:[%s1611_s10 + $0xd0] sm:$0xff] %v841_v20  ;;  %v826_v30 = vadd.f32 %v1605_v25, %v787_v21  ;;  %v842_v31 = vadd.f32 %v1605_v25, %v803_v22 }
 0x164   : > { %855 = vst [vmem:[%s1611_s10 + $0x40] sm:$0xff] %v823_v26  ;;  %871 = vst [vmem:[%s1611_s10 + $0xc0] sm:$0xff] %v839_v27  ;;  %v824_v32 = vadd.f32 %v1605_v25, %v785_v28  ;;  %v840_v33 = vadd.f32 %v1605_v25, %v801_v29 }
 0x165   : > { %858 = vst [vmem:[%s1611_s10 + $0x58] sm:$0xff] %v826_v30  ;;  %874 = vst [vmem:[%s1611_s10 + $0xd8] sm:$0xff] %v842_v31 }
 0x166   : > { %856 = vst [vmem:[%s1611_s10 + $0x48] sm:$0xff] %v824_v32  ;;  %872 = vst [vmem:[%s1611_s10 + $0xc8] sm:$0xff] %v840_v33  ;;  %v1105_v34 = vpop.f32.mrb[12].mxu0  ;;  %v1121_v35 = vpop.f32.mrb[12].mxu1 }
 0x167   : > { %v790_v36 = vmul.f32 0.16666667, %v1105_v34  ;;  %v806_v37 = vmul.f32 0.16666667, %v1121_v35  ;;  %v526_v38 = vpop.f32.mrb[13].mxu0  ;;  %v590_v39 = vpop.f32.mrb[13].mxu1 }
 0x168   : > { %v788_v40 = vmul.f32 0.16666667, %v526_v38  ;;  %v804_v41 = vmul.f32 0.16666667, %v590_v39  ;;  %v1106_v42 = vpop.f32.mrb[14].mxu0  ;;  %v1122_v43 = vpop.f32.mrb[14].mxu1 }
 0x169   : > { %v829_v44 = vadd.f32 %v1605_v25, %v790_v36  ;;  %v845_v45 = vadd.f32 %v1605_v25, %v806_v37  ;;  %v791_v46 = vmul.f32 0.16666667, %v1106_v42  ;;  %v807_v47 = vmul.f32 0.16666667, %v1122_v43  ;;  %v529_v48 = vpop.f32.mrb[15].mxu0  ;;  %v593_v49 = vpop.f32.mrb[15].mxu1 }
 0x16a   : > { %v827_v50 = vadd.f32 %v1605_v25, %v788_v40  ;;  %v843_v51 = vadd.f32 %v1605_v25, %v804_v41  ;;  %v789_v52 = vmul.f32 0.16666667, %v529_v48  ;;  %v805_v53 = vmul.f32 0.16666667, %v593_v49 }
 0x16b   : > { %861 = vst [vmem:[%s1611_s10 + $0x70] sm:$0xff] %v829_v44  ;;  %877 = vst [vmem:[%s1611_s10 + $0xf0] sm:$0xff] %v845_v45  ;;  %v830_v54 = vadd.f32 %v1605_v25, %v791_v46  ;;  %v846_v55 = vadd.f32 %v1605_v25, %v807_v47 }
 0x16c   : > { %859 = vst [vmem:[%s1611_s10 + $0x60] sm:$0xff] %v827_v50  ;;  %875 = vst [vmem:[%s1611_s10 + $0xe0] sm:$0xff] %v843_v51  ;;  %v828_v56 = vadd.f32 %v1605_v25, %v789_v52  ;;  %v844_v57 = vadd.f32 %v1605_v25, %v805_v53 }
 0x16d   : > { %862 = vst [vmem:[%s1611_s10 + $0x78] sm:$0xff] %v830_v54  ;;  %878 = vst [vmem:[%s1611_s10 + $0xf8] sm:$0xff] %v846_v55 }
 0x16e   : > { %860 = vst [vmem:[%s1611_s10 + $0x68] sm:$0xff] %v828_v56  ;;  %876 = vst [vmem:[%s1611_s10 + $0xe8] sm:$0xff] %v844_v57 }
 0x16f   : > { %1311 = shalt.err (!%p1308_p5)
}
 0x170   : > { %s1312_s29 = scalar_lea.hbm %s1670_s19, 4096  ;;  %s1316_s20 = scalar_lea.hbm %s1732_s3, 8192 }
 0x171   : > { %p1313_p9 = scmp.ne.s32.totalorder %s1670_s19, %s1312_s29  ;;  %p1317_p3 = scmp.lt.u32.totalorder %s1670_s19, %s1732_s3 }
 0x172   : > { %p1318_p7 = scmp.lt.u32.totalorder %s1316_s20, %s1312_s29  ;;  %p1320_p4 = scmp.lt.u32.totalorder %s1312_s29, %s1670_s19 }
 0x173   : > { %p1314_p1 = pnand %p1313_p9, %p1512_p10 }
 0x174   : > { %p1319_p13 = por %p1318_p7, %p1317_p3 }
 0x175   : > { %p1315_p2 = pneg %p1314_p1 }
 0x176   : > { %p1321_p6 = por %p1320_p4, %p1319_p13 }
 0x178   : > { %p1322_p8 = pnand %p1321_p6, %p1315_p2 }
 0x17a   : > { %1325 = shalt.err (!%p1322_p8)
}
 0x17b   : > { %s1391_s10 = smov 128   ;;  %s1392_s11 = smov 8  }
 0x17c   : > { %1145 = dma.vmem_to_hbm [thread:$0]  (%p1512_p10), %s1672_s9, 4096, %s1670_s19, %s880_s25, %s1391_s10, %s1391_s10, %s1392_s11  }
 0x17d PF: > { %s909_s15 = sand.u32 1, %s1364_s12   ;;  %p1750_p12 = scmp.ne.s32.totalorder %s1740_s23, 0 }
 0x17e   : > { %p1751_p11 = scmp.ge.s32.totalorder %s1384_s17, 2  ;;  %s910_s18 = scalar_lea.sflag [#allocation5], %s909_s15 }
 0x180   : > { %p1156_p0 = pnand %p1751_p11, %p1750_p12 }
 0x182   : > { %1359 = dma.done.wait (!%p1156_p0), %s910_s18, 4096  }
 0x183   : > { %1361 = vsyncadd (!%p1156_p0), %s910_s18, 4294963200  ;;  %s20_s17 = sadd.s32 1, %s1384_s17   ;;  %s1752_s12 = smov %s1368_s13 }
 0x184   : > { %p17_p5 = scmp.ge.s32.totalorder %s20_s17, 4   ;;  %s1753_s13 = smov %s1372_s14 }
 0x185   : > { %s1754_s14 = smov %s1521_s5  ;;  %s1755_s15 = smov %s1380_s16 }
 0x186   : > { %s1756_s16 = smov %s1758_s28  ;;  %19 = sbr.rel (!%p17_p5) target bundleno = 7 (0x7), region = 97 }
 0x18d   :  { %915 = vsyncpa [#allocation4], 1 }
 0x18e   :  { %917 = vsyncpa [#allocation4 + $0x1], 1 }
 0x18f   :  { %918 = vsyncpa [#allocation7], 1 }
 0x190   :  { %919 = vsyncpa [#allocation5], 1 }
 0x191   :  { %921 = vsyncpa [#allocation5 + $0x1], 1 }

</bundles_post_ra>
